<compile_context>
chip_gen: v5e
topology: v5e:2x2
jax: 0.10.0
libtpu: 0.0.40
codegen_flags: <defaults>
</compile_context>

<pallas_src>
import jax
import jax.numpy as jnp
from jax.experimental import pallas as pl
from jax.experimental.pallas import tpu as pltpu


# ---------------------------------------------------------------------------
# Precompute full-dk-width tables (one-time, matches precompute_freqs_cis):
#   cos_full[t, 2i] = cos_full[t, 2i+1] = cos(t * theta^(-2i/dk))
#   sin_full[t, 2i] = -sin(...),  sin_full[t, 2i+1] = +sin(...)
# ---------------------------------------------------------------------------
def precompute_rope_tables(dk, max_len, theta=1000.0):
    assert dk % 2 == 0
    half = dk // 2
    inv_freq = 1.0 / theta ** (
        jnp.arange(0, dk, 2)[:half].astype(jnp.float32) / dk
    )
    t = jnp.arange(max_len, dtype=jnp.float32)
    ang = jnp.outer(t, inv_freq)                       # (max_len, dk//2)
    cos = jnp.cos(ang)
    sin = jnp.sin(ang)
    cos_full = jnp.repeat(cos, 2, axis=1)              # [c0,c0,c1,c1,...]
    sin_full = jnp.stack([-sin, sin], axis=-1).reshape(max_len, dk)
    return cos_full, sin_full


# ---------------------------------------------------------------------------
# Pallas kernel: one lane-dense (ROWS, L) tile per grid step.
#   out[2i]   = x[2i]  *cos - x[2i+1]*sin
#   out[2i+1] = x[2i+1]*cos + x[2i]  *sin
# expressed as  out = x*cos_dup + swap_pairs(x)*sin_signed, with the pair
# swap built from two lane rotations + an even-lane select.
# ---------------------------------------------------------------------------
def _rope_kernel(x_ref, cos_ref, sin_ref, o_ref):
    L = x_ref.shape[-1]
    cs = cos_ref[...]                                   # (ROWS, L)
    sn = sin_ref[...]                                   # (ROWS, L)
    x = x_ref[...].astype(cs.dtype)                     # (ROWS, L)

    # pair-partner swizzle: [e0,o0,e1,o1,...] -> [o0,e0,o1,e1,...]
    x_next = pltpu.roll(x, L - 1, axis=1)               # lane i <- x[i+1]
    x_prev = pltpu.roll(x, 1, axis=1)                   # lane i <- x[i-1]
    lane = jax.lax.broadcasted_iota(jnp.int32, (1, L), 1)   # tiny mask, hoisted
    x_swap = jnp.where((lane & 1) == 0, x_next, x_prev)

    o_ref[...] = (x * cs + x_swap * sn).astype(o_ref.dtype)


# ---------------------------------------------------------------------------
# Generation-aware block-size target / scoped-VMEM limit.
# ---------------------------------------------------------------------------
def _vmem_budget():
    cap = None
    try:
        cap = getattr(pltpu.get_tpu_info(), "vmem_capacity_bytes", None)
    except Exception:
        cap = None
    if cap is not None and cap >= 128 * 1024 * 1024:       # v5e / v6e
        return 4 * 1024 * 1024, 64 * 1024 * 1024
    return 2 * 1024 * 1024, 32 * 1024 * 1024               # v7x / unknown


def apply_rotation(x, cos_full, sin_full, *, bf16_math=False):
    """x: (B, H, T, dk) interleaved pairs -> rotated, same shape/dtype."""
    B, H, T, dk = x.shape
    BH = B * H
    itemsize = x.dtype.itemsize
    target_bytes, vmem_limit = _vmem_budget()

    cos_t = cos_full[:T]
    sin_t = sin_full[:T]
    if bf16_math:
        # TODO(synk): bf16 math deviates slightly from torch's .float() upcast.
        cos_t = cos_t.astype(jnp.bfloat16)
        sin_t = sin_t.astype(jnp.bfloat16)

    # sublane multiple for clean vreg packing (f32->8, bf16->16, int8->32)
    sub = max(8, 32 // max(1, min(itemsize, cos_t.dtype.itemsize)))

    # ---- lane packing: view each (T, dk) plane as (R, L) with L = 128 lanes
    # when possible.  Pairs stay (even, odd)-lane aligned because dk and 128
    # are both even, so the in-kernel swizzle is unchanged.
    if (T * dk) % 128 == 0:
        L, R = 128, (T * dk) // 128
    else:
        L, R = dk, T                                     # fallback: unpacked
    cos_t = cos_t.reshape(R, L)
    sin_t = sin_t.reshape(R, L)
    plane_bytes = R * L * itemsize

    # ---------------- GROUP branch: fold q (b, h) planes per block ----------
    q = 0
    if plane_bytes <= target_bytes:
        q_cap = max(1, target_bytes // plane_bytes)
        if q_cap >= BH:
            q = BH
        else:
            divs = [d for d in range(1, BH + 1)
                    if BH % d == 0 and d <= q_cap and (d * R) % sub == 0]
            if divs:
                # prefer an even number of grid steps (v7x: 2 TCs share grid)
                even = [d for d in divs if (BH // d) % 2 == 0]
                q = max(even) if even else max(divs)

    if q >= 1:
        ROWS = q * R
        nb = BH // q
        x2 = x.reshape(BH * R, L)
        cos_b = jnp.tile(cos_t, (q, 1)) if q > 1 else cos_t     # tiny, one-time
        sin_b = jnp.tile(sin_t, (q, 1)) if q > 1 else sin_t

        out2 = pl.pallas_call(
            _rope_kernel,
            out_shape=jax.ShapeDtypeStruct((BH * R, L), x.dtype),
            grid_spec=pltpu.PrefetchScalarGridSpec(
                num_scalar_prefetch=0,
                grid=(nb,),
                in_specs=[
                    pl.BlockSpec((ROWS, L), lambda i: (i, 0)),
                    pl.BlockSpec((ROWS, L), lambda i: (0, 0)),   # resident
                    pl.BlockSpec((ROWS, L), lambda i: (0, 0)),   # resident
                ],
                out_specs=pl.BlockSpec((ROWS, L), lambda i: (i, 0)),
            ),
            compiler_params=pltpu.CompilerParams(
                dimension_semantics=("parallel",),
                vmem_limit_bytes=vmem_limit,
            ),
        )(x2, cos_b, sin_b)
        return out2.reshape(B, H, T, dk)

    # ---------------- SPLIT branch: chunk rows inside each (b, h) plane -----
    x3 = x.reshape(BH, R, L)
    chunk = (target_bytes // (L * itemsize)) // sub * sub
    chunk = int(min(max(chunk, sub), R))
    p = pl.cdiv(R, chunk)
    rp = p * chunk
    if rp != R:  # pad tables so the ragged last row-block reads in-bounds
        cos_t = jnp.pad(cos_t, ((0, rp - R), (0, 0)))
        sin_t = jnp.pad(sin_t, ((0, rp - R), (0, 0)))

    out3 = pl.pallas_call(
        _rope_kernel,
        out_shape=jax.ShapeDtypeStruct((BH, R, L), x.dtype),
        grid_spec=pltpu.PrefetchScalarGridSpec(
            num_scalar_prefetch=0,
            # row-chunk axis OUTER so cos/sin stay resident across the inner
            # B*H sweep (their block index ignores the inner axis).
            grid=(p, BH),
            in_specs=[
                pl.BlockSpec((None, chunk, L), lambda ri, bi: (bi, ri, 0)),
                pl.BlockSpec((chunk, L), lambda ri, bi: (ri, 0)),
                pl.BlockSpec((chunk, L), lambda ri, bi: (ri, 0)),
            ],
            out_specs=pl.BlockSpec((None, chunk, L), lambda ri, bi: (bi, ri, 0)),
        ),
        compiler_params=pltpu.CompilerParams(
            dimension_semantics=("parallel", "parallel"),
            vmem_limit_bytes=vmem_limit,
        ),
    )(x3, cos_t, sin_t)
    return out3.reshape(B, H, T, dk)


def rope_forward(xq, xk, cos_full, sin_full):
    """Mirrors RotaryPositionalEncoding.forward(xq, xk)."""
    # TODO(synk): standalone RoPE is pure HBM bandwidth; the real win is fusing
    # the rotation into the QK-projection / attention kernel that already
    # streams q/k through VMEM (removes one full HBM round trip).
    return (
        apply_rotation(xq, cos_full, sin_full),
        apply_rotation(xk, cos_full, sin_full),
    )


# ---------------------------------------------------------------------------
# pure-JAX reference (exact semantics of the torch module)
# ---------------------------------------------------------------------------
def _rope_ref(x, dk, max_len, theta):
    B, H, T, d = x.shape
    half = d // 2
    inv_freq = 1.0 / theta ** (jnp.arange(0, d, 2)[:half].astype(jnp.float32) / d)
    ang = jnp.outer(jnp.arange(max_len, dtype=jnp.float32), inv_freq)[:T]
    c = jnp.cos(ang)[None, None]
    s = jnp.sin(ang)[None, None]
    xr = x.astype(jnp.float32).reshape(B, H, T, half, 2)
    xe, xo = xr[..., 0], xr[..., 1]
    oe = xe * c - xo * s
    oo = xe * s + xo * c
    return jnp.stack([oe, oo], axis=-1).reshape(B, H, T, d).astype(x.dtype)


if __name__ == "__main__":
    B, H, H_KV, T, DK = 2, 4, 2, 8, 32
    MAX_LEN, THETA = 64, 1000.0

    key = jax.random.PRNGKey(0)
    kq, kk = jax.random.split(key)
    xq = jax.random.normal(kq, (B, H, T, DK), dtype=jnp.float32)
    xk = jax.random.normal(kk, (B, H_KV, T, DK), dtype=jnp.float32)

    cos_full, sin_full = precompute_rope_tables(DK, MAX_LEN, THETA)

    q_out, k_out = rope_forward(xq, xk, cos_full, sin_full)
    q_out = jax.block_until_ready(q_out)
    k_out = jax.block_until_ready(k_out)

    q_ref = _rope_ref(xq, DK, MAX_LEN, THETA)
    k_ref = _rope_ref(xk, DK, MAX_LEN, THETA)

    assert q_out.shape == xq.shape and q_out.dtype == xq.dtype
    assert k_out.shape == xk.shape and k_out.dtype == xk.dtype
    assert jnp.allclose(q_out, q_ref, atol=1e-5, rtol=1e-5)
    assert jnp.allclose(k_out, k_ref, atol=1e-5, rtol=1e-5)

    # also exercise the unpacked fallback path (T*dk not a multiple of 128)
    T2 = 6
    xq2 = jax.random.normal(kq, (B, H, T2, DK), dtype=jnp.float32)
    q2_out = jax.block_until_ready(apply_rotation(xq2, cos_full, sin_full))
    assert jnp.allclose(q2_out, _rope_ref(xq2, DK, MAX_LEN, THETA),
                        atol=1e-5, rtol=1e-5)

    print("KERNEL_OK")
</pallas_src>

<mosaic_0001>
module attributes {stable_mosaic.version = 11 : i64} {
  func.func @_rope_kernel(%arg0: i32, %arg1: memref<16x128xf32, #tpu.memory_space<vmem>>, %arg2: memref<16x128xf32, #tpu.memory_space<vmem>>, %arg3: memref<16x128xf32, #tpu.memory_space<vmem>>, %arg4: memref<16x128xf32, #tpu.memory_space<vmem>>) attributes {dimension_semantics = [#tpu.dimension_semantics<parallel>], iteration_bounds = array<i64: 1>, scalar_prefetch = 0 : i64, scratch_operands = 0 : i64, tpu.core_type = #tpu.core_type<tc>, window_params = [{transform_indices = @transform_0, window_bounds = array<i64: 16, 128>}, {pipeline_mode = #tpu.pipeline_mode<synchronous>, transform_indices = @transform_1, window_bounds = array<i64: 16, 128>}, {pipeline_mode = #tpu.pipeline_mode<synchronous>, transform_indices = @transform_2, window_bounds = array<i64: 16, 128>}, {transform_indices = @transform_3, window_bounds = array<i64: 16, 128>}]} {
    %c0 = arith.constant 0 : index
    %c0_0 = arith.constant 0 : index
    %0 = vector.load %arg2[%c0, %c0_0] : memref<16x128xf32, #tpu.memory_space<vmem>>, vector<16x128xf32>
    %c0_1 = arith.constant 0 : index
    %c0_2 = arith.constant 0 : index
    %1 = vector.load %arg3[%c0_1, %c0_2] : memref<16x128xf32, #tpu.memory_space<vmem>>, vector<16x128xf32>
    %c0_3 = arith.constant 0 : index
    %c0_4 = arith.constant 0 : index
    %2 = vector.load %arg1[%c0_3, %c0_4] : memref<16x128xf32, #tpu.memory_space<vmem>>, vector<16x128xf32>
    %c127_i32 = arith.constant 127 : i32
    %3 = tpu.dynamic_rotate %2 by %c127_i32 dim 1 : vector<16x128xf32>, i32 -> vector<16x128xf32>
    %c1_i32 = arith.constant 1 : i32
    %4 = tpu.dynamic_rotate %2 by %c1_i32 dim 1 : vector<16x128xf32>, i32 -> vector<16x128xf32>
    %5 = tpu.iota {dimensions = array<i32: 1>} : vector<1x128xi32>
    %c1_i32_5 = arith.constant 1 : i32
    %6 = vector.broadcast %c1_i32_5 : i32 to vector<1x128xi32>
    %7 = arith.andi %5, %6 : vector<1x128xi32>
    %c0_i32 = arith.constant 0 : i32
    %8 = vector.broadcast %c0_i32 : i32 to vector<1x128xi32>
    %9 = arith.cmpi eq, %7, %8 : vector<1x128xi32>
    %10 = vector.shape_cast %9 : vector<1x128xi1> to vector<1x128xi1>
    %11 = vector.broadcast %10 : vector<1x128xi1> to vector<16x128xi1>
    %12 = arith.select %11, %3, %4 : vector<16x128xi1>, vector<16x128xf32>
    %13 = arith.mulf %2, %0 : vector<16x128xf32>
    %14 = arith.mulf %12, %1 : vector<16x128xf32>
    %15 = arith.addf %13, %14 : vector<16x128xf32>
    %c0_6 = arith.constant 0 : index
    %c0_7 = arith.constant 0 : index
    %16 = vector.load %arg4[%c0_6, %c0_7] : memref<16x128xf32, #tpu.memory_space<vmem>>, vector<16x128xf32>
    tpu.vector_store %arg4[%c0_6, %c0_7], %15 {strides = array<i32>} : memref<16x128xf32, #tpu.memory_space<vmem>>, vector<16x128xf32>,
    return
  }
  func.func @transform_0(%arg0: i32) -> (i32, i32) {
    %c0_i32 = arith.constant 0 : i32
    %c0_i32_0 = arith.constant 0 : i32
    return %arg0, %c0_i32 : i32, i32
  }
  func.func @transform_1(%arg0: i32) -> (i32, i32) {
    %c0_i32 = arith.constant 0 : i32
    %c0_i32_0 = arith.constant 0 : i32
    %c0_i32_1 = arith.constant 0 : i32
    return %c0_i32, %c0_i32_0 : i32, i32
  }
  func.func @transform_2(%arg0: i32) -> (i32, i32) {
    %c0_i32 = arith.constant 0 : i32
    %c0_i32_0 = arith.constant 0 : i32
    %c0_i32_1 = arith.constant 0 : i32
    return %c0_i32, %c0_i32_0 : i32, i32
  }
  func.func @transform_3(%arg0: i32) -> (i32, i32) {
    %c0_i32 = arith.constant 0 : i32
    %c0_i32_0 = arith.constant 0 : i32
    return %arg0, %c0_i32 : i32, i32
  }
}

</mosaic_0001>

<bundles_post_ra>
// kernel: tpu_custom_call.1
= control target key start
LH: loop header
LB: loop body
LE: loop exit
PB: predicated region body
PF: predicated region fallthrough
CT: control target
= control target key end

     0   :  { %8 = vsyncpa [#allocation3], 0  ;;  %s282_s0 = inlined_call_operand.hbm [shape: f32[16,128], index: 0, kind: input, shape index: {}]   ;;  %s283_s1 = inlined_call_operand.hbm [shape: f32[16,128], index: 1, kind: input, shape index: {}]   ;;  %s284_s2 = inlined_call_operand.hbm [shape: f32[16,128], index: 2, kind: input, shape index: {}]   ;;  %s285_s3 = inlined_call_operand.hbm [shape: f32[16,128], index: 3, kind: output, shape index: {}]  }
   0x1   :  { %9 = vsyncpa [#allocation6], 0 }
   0x2   :  { %10 = vsyncpa [#allocation4], 0  ;;  %s28_s14 = sshll.u32 %s283_s1, 4  ;;  %s222_s15 = smov [#allocation5]   ;;  %s29_s14 = int_to_ptr.hbm [resolvable:$true] %s28_s14 }
   0x3   :  { %s30_s16 = sshll.u32 %s222_s15, 4  ;;  %s15_s19 = sshll.u32 %s282_s0, 4  ;;  %s31_s16 = int_to_ptr.vmem [resolvable:$true] %s30_s16  ;;  %s16_s19 = int_to_ptr.hbm [resolvable:$true] %s15_s19 }
   0x4   :  { %s223_s20 = smov 128   ;;  %s224_s21 = smov 8  }
   0x5   :  { %36 = dma.hbm_to_vmem [thread:$0]  %s29_s14, 256, %s31_s16, [#allocation6], %s223_s20, %s223_s20, %s224_s21  }
   0x6   :  { %s225_s22 = smov [#allocation2]   ;;  %s41_s1 = sshll.u32 %s284_s2, 4  ;;  %s42_s1 = int_to_ptr.hbm [resolvable:$true] %s41_s1 }
   0x7   :  { %s17_s23 = sshll.u32 %s225_s22, 4  ;;  %s226_s0 = smov [#allocation7]   ;;  %s18_s23 = int_to_ptr.vmem [resolvable:$true] %s17_s23 }
   0x8   :  { %23 = dma.hbm_to_vmem [thread:$0]  %s16_s19, 256, %s18_s23, [#allocation3], %s223_s20, %s223_s20, %s224_s21  }
   0x9   :  { %s43_s26 = sshll.u32 %s226_s0, 4  ;;  %s44_s26 = int_to_ptr.vmem [resolvable:$true] %s43_s26 }
   0xa   :  { %49 = dma.hbm_to_vmem [thread:$0]  %s42_s1, 256, %s44_s26, [#allocation6], %s223_s20, %s223_s20, %s224_s21  }
   0xb   :  { %216 = dma.done.wait [#allocation3], 256  }
   0xc   :  { %217 = vsyncadd [#allocation3], 4294967040 }
   0xd   :  { %218 = dma.done.wait [#allocation6], 512  }
   0xe   :  { %219 = vsyncadd [#allocation6], 4294966784  ;;  %v66_v0 = vld [vmem:[#allocation2] sm:$0xff]  ;;  %s227_s27 = smov 1   ;;  %s228_s2 = smov 127   ;;  %v67_v1 = vld [vmem:[#allocation2 + $0x8] sm:$0xff]  ;;  %v76_v2 = vlaneseq }
   0xf   :  { %72 = vrot.lane.b32.xlu1 %v66_v0, %s227_s27  ;;  %68 = vrot.lane.b32.xlu0 %v66_v0, %s228_s2  ;;  %v62_v5 = vld [vmem:[#allocation5] sm:$0xff]  ;;  %v64_v7 = vld [vmem:[#allocation7] sm:$0xff]  ;;  %v63_v14 = vld [vmem:[#allocation5 + $0x8] sm:$0xff]  ;;  %s229_s28 = smov [#allocation8]   ;;  %s98_s5 = sshll.u32 %s285_s3, 4  ;;  %s99_s5 = int_to_ptr.hbm [resolvable:$true] %s98_s5 }
  0x10   :  { %v77_v3 = vand.u32 127, %v76_v2  ;;  %v84_v8 = vmul.f32 %v66_v0, %v62_v5  ;;  %v65_v15 = vld [vmem:[#allocation7 + $0x8] sm:$0xff]  ;;  %v85_v16 = vmul.f32 %v67_v1, %v63_v14  ;;  %s96_s29 = sshll.u32 %s229_s28, 4  ;;  %s97_s29 = int_to_ptr.vmem [resolvable:$true] %s96_s29 }
  0x12   :  { %v78_v4 = vand.u32 1, %v77_v3 }
  0x14   :  { %vm268_vm0 = vcmp.eq.s32.totalorder %v78_v4, 0 }
  0x17   :  { %74 = vrot.lane.b32.xlu1 %v67_v1, %s227_s27  ;;  %70 = vrot.lane.b32.xlu0 %v67_v1, %s228_s2 }
  0x81   :  { %v73_v9 = vpop.permute.xlu1 %72  ;;  %v69_v10 = vpop.permute.xlu0 %68 }
  0x82   :  { %v82_v11 = vsel %vm268_vm0, %v69_v10, %v73_v9 }
  0x83   :  { %v86_v12 = vmul.f32 %v82_v11, %v64_v7 }
  0x85   :  { %v88_v13 = vadd.f32 %v86_v12, %v84_v8 }
  0x87   :  { %90 = vst [vmem:[#allocation8] sm:$0xff] %v88_v13 }
  0x89   :  { %v75_v17 = vpop.permute.xlu1 %74  ;;  %v71_v18 = vpop.permute.xlu0 %70 }
  0x8a   :  { %v83_v19 = vsel %vm268_vm0, %v71_v18, %v75_v17 }
  0x8b   :  { %v87_v20 = vmul.f32 %v83_v19, %v65_v15 }
  0x8d   :  { %v89_v21 = vadd.f32 %v87_v20, %v85_v16 }
  0x8f   :  { %91 = vst [vmem:[#allocation8 + $0x8] sm:$0xff] %v89_v21 }
  0x90   :  { %104 = dma.vmem_to_hbm [thread:$0]  %s97_s29, 256, %s99_s5, [#allocation4], %s223_s20, %s223_s20, %s224_s21  }
  0x91   :  { %220 = dma.done.wait [#allocation4], 256  }
  0x92   :  { %221 = vsyncadd [#allocation4], 4294967040 }
  0x93   :  { %109 = vsyncpa [#allocation3], 1 }
  0x94   :  { %110 = vsyncpa [#allocation6], 1 }
  0x95   :  { %111 = vsyncpa [#allocation4], 1 }

</bundles_post_ra>
